<compile_context>
chip_gen: v5e
topology: v5e:2x2
jax: 0.10.0
libtpu: 0.0.40
codegen_flags: <defaults>
</compile_context>

<pallas_src>
import functools
import math

import jax
import jax.numpy as jnp
import numpy as np
from jax import lax
from jax.experimental import pallas as pl
from jax.experimental.pallas import tpu as pltpu


def _rotary_attn_head_kernel(x_ref, wq_ref, bq_ref, wk_ref, bk_ref, wv_ref, bv_ref,
                             cos_ref, sin_ref, wo_ref, bo_ref, out_ref, acc_ref,
                             *, head_dim, scale, mm_dtype, roll_rope):
    """One (batch, head) grid step: project head h, RoPE, attention, fold Wo[h]."""
    h = pl.program_id(1)

    @pl.when(h == 0)
    def _init():
        acc_ref[...] = jnp.zeros_like(acc_ref)

    x = x_ref[...]                                            # (S, D) mm_dtype

    # Per-head projections: MXU with f32 accumulation, f32 bias add.
    # 1/sqrt(head_dim) folded into q (RoPE is linear, so scaling commutes).
    q = (jnp.dot(x, wq_ref[...], preferred_element_type=jnp.float32)
         + bq_ref[...]) * scale                               # (S, hd) f32
    k = jnp.dot(x, wk_ref[...], preferred_element_type=jnp.float32) + bk_ref[...]
    v = jnp.dot(x, wv_ref[...], preferred_element_type=jnp.float32) + bv_ref[...]

    cos = cos_ref[...]                                        # (S, hd)  [cos  | cos ]
    sinf = sin_ref[...]                                       # (S, hd)  [-sin | +sin]

    dn = (((1,), (1,)), ((), ()))    # contract last dims: q @ k^T without explicit k.T

    half = head_dim // 2
    if roll_rope:
        # head_dim % 128 == 0: full-width rotation via XLU roll (sign folded
        # into the sin table) and a SINGLE K=head_dim contraction per head.
        q_rot = q * cos + pltpu.roll(q, half, axis=-1) * sinf
        k_rot = k * cos + pltpu.roll(k, half, axis=-1) * sinf
        scores = lax.dot_general(q_rot.astype(mm_dtype), k_rot.astype(mm_dtype), dn,
                                 preferred_element_type=jnp.float32)
    else:
        # Small head_dim (toy shapes): split-half arithmetic form; the rotated
        # halves are never re-concatenated (scores = qr1@kr1^T + qr2@kr2^T).
        cos_h = cos[:, :half]                                 # cos
        sin_h = sinf[:, half:]                                # +sin
        q1, q2 = q[:, :half], q[:, half:]
        k1, k2 = k[:, :half], k[:, half:]
        qr1 = q1 * cos_h - q2 * sin_h
        qr2 = q2 * cos_h + q1 * sin_h
        kr1 = k1 * cos_h - k2 * sin_h
        kr2 = k2 * cos_h + k1 * sin_h
        scores = (lax.dot_general(qr1.astype(mm_dtype), kr1.astype(mm_dtype), dn,
                                  preferred_element_type=jnp.float32)
                  + lax.dot_general(qr2.astype(mm_dtype), kr2.astype(mm_dtype), dn,
                                    preferred_element_type=jnp.float32))

    # Numerically stable softmax in f32; divide moved to the EUP slot.
    m = jnp.max(scores, axis=-1, keepdims=True)
    p = jnp.exp(scores - m)
    l = jnp.sum(p, axis=-1, keepdims=True)
    attn = p * pl.reciprocal(l, approx=True)
    # TODO(synk): dropout(0.1) on attn treated as identity (eval mode).

    pv = jnp.dot(attn.astype(mm_dtype), v.astype(mm_dtype),
                 preferred_element_type=jnp.float32)          # (S, hd) f32

    # Fold this head's slice of the output projection: acc += pv @ Wo[h].
    # All accumulator stores are full-D lane-dense (no masked per-head vst).
    acc_ref[...] += jnp.dot(pv.astype(mm_dtype), wo_ref[...],
                            preferred_element_type=jnp.float32)

    @pl.when(h == pl.num_programs(1) - 1)
    def _finalize():
        out_ref[...] = (acc_ref[...] + bo_ref[...]).astype(out_ref.dtype)


def rotary_self_attention_pallas(x, params, n_heads, *, use_bf16_matmul=True,
                                 out_dtype=None):
    B, S, D = x.shape
    hd = D // n_heads
    assert hd * n_heads == D, "dim must be divisible by n_heads"
    assert hd % 2 == 0, "head_dim must be even for rotary embeddings"

    mm_dtype = jnp.bfloat16 if use_bf16_matmul else jnp.float32
    if out_dtype is None:
        out_dtype = jnp.bfloat16 if use_bf16_matmul else x.dtype

    wq, bq, wk, bk, wv, bv, wo, bo = (params[k] for k in
                                      ("wq", "bq", "wk", "bk", "wv", "bv", "wo", "bo"))

    # ---- glue (plain JAX): head axis becomes a LEADING dim so every kernel
    # block covers its full last-two dims; per-head weight blocks stream.
    def head_cols(w):          # (D, D) -> (H, D, hd): head h's output columns
        return jnp.transpose(w.reshape(D, n_heads, hd), (1, 0, 2))

    wq_h = head_cols(wq).astype(mm_dtype)
    wk_h = head_cols(wk).astype(mm_dtype)
    wv_h = head_cols(wv).astype(mm_dtype)
    bq_h = bq.reshape(n_heads, 1, hd).astype(jnp.float32)
    bk_h = bk.reshape(n_heads, 1, hd).astype(jnp.float32)
    bv_h = bv.reshape(n_heads, 1, hd).astype(jnp.float32)
    wo_h = wo.reshape(n_heads, hd, D).astype(mm_dtype)    # head h's input rows
    bo_r = bo.reshape(1, D).astype(jnp.float32)

    # Rotary tables at FULL head_dim width (lane-dense for hd >= 128), with the
    # rotate_half sign folded into sin:  cos_full = [cos|cos], sin_fold = [-sin|+sin].
    inv_freq = 1.0 / (10000.0 ** (jnp.arange(0, hd, 2, dtype=jnp.float32) / hd))
    t = jnp.arange(S, dtype=jnp.float32)
    freqs = jnp.einsum("i,j->ij", t, inv_freq)             # (S, hd/2)
    cos_half = jnp.cos(freqs)
    sin_half = jnp.sin(freqs)
    cos_full = jnp.concatenate([cos_half, cos_half], axis=-1)     # (S, hd)
    sin_fold = jnp.concatenate([-sin_half, sin_half], axis=-1)    # (S, hd)

    x_mm = x.astype(mm_dtype)

    kernel = functools.partial(
        _rotary_attn_head_kernel,
        head_dim=hd, scale=1.0 / math.sqrt(float(hd)),
        mm_dtype=mm_dtype, roll_rope=(hd % 128 == 0))

    grid = (B, n_heads)
    in_specs = [
        pl.BlockSpec((pl.Squeezed(), S, D), lambda b, h: (b, 0, 0)),    # x (resident per batch)
        pl.BlockSpec((pl.Squeezed(), D, hd), lambda b, h: (h, 0, 0)),   # Wq[h]
        pl.BlockSpec((pl.Squeezed(), 1, hd), lambda b, h: (h, 0, 0)),   # bq[h]
        pl.BlockSpec((pl.Squeezed(), D, hd), lambda b, h: (h, 0, 0)),   # Wk[h]
        pl.BlockSpec((pl.Squeezed(), 1, hd), lambda b, h: (h, 0, 0)),   # bk[h]
        pl.BlockSpec((pl.Squeezed(), D, hd), lambda b, h: (h, 0, 0)),   # Wv[h]
        pl.BlockSpec((pl.Squeezed(), 1, hd), lambda b, h: (h, 0, 0)),   # bv[h]
        pl.BlockSpec((S, hd), lambda b, h: (0, 0)),                     # cos (full width)
        pl.BlockSpec((S, hd), lambda b, h: (0, 0)),                     # sin (sign-folded)
        pl.BlockSpec((pl.Squeezed(), hd, D), lambda b, h: (h, 0, 0)),   # Wo[h]
        pl.BlockSpec((1, D), lambda b, h: (0, 0)),                      # bo
    ]
    out_specs = pl.BlockSpec((pl.Squeezed(), S, D), lambda b, h: (b, 0, 0))

    return pl.pallas_call(
        kernel,
        grid=grid,
        in_specs=in_specs,
        out_specs=out_specs,
        out_shape=jax.ShapeDtypeStruct((B, S, D), out_dtype),
        scratch_shapes=[pltpu.VMEM((S, D), jnp.float32)],   # f32 output accumulator
        compiler_params=pltpu.CompilerParams(
            dimension_semantics=("parallel", "arbitrary"),
            vmem_limit_bytes=64 * 1024 * 1024),
    )(x_mm, wq_h, bq_h, wk_h, bk_h, wv_h, bv_h, cos_full, sin_fold, wo_h, bo_r)


def rotary_self_attention_ref(x, params, n_heads):
    """Plain-JAX reference mirroring the PyTorch forward (dropout = identity)."""
    B, S, D = x.shape
    hd = D // n_heads
    q = x @ params["wq"] + params["bq"]
    k = x @ params["wk"] + params["bk"]
    v = x @ params["wv"] + params["bv"]
    q = q.reshape(B, S, n_heads, hd)
    k = k.reshape(B, S, n_heads, hd)
    v = v.reshape(B, S, n_heads, hd)

    inv_freq = 1.0 / (10000.0 ** (jnp.arange(0, hd, 2, dtype=jnp.float32) / hd))
    t = jnp.arange(S, dtype=jnp.float32)
    freqs = jnp.einsum("i,j->ij", t, inv_freq)
    emb = jnp.concatenate([freqs, freqs], axis=-1)
    cos = jnp.cos(emb)[None, :, None, :]       # (1, S, 1, hd)
    sin = jnp.sin(emb)[None, :, None, :]

    def rot_half(t_):
        t1, t2 = jnp.split(t_, 2, axis=-1)
        return jnp.concatenate([-t2, t1], axis=-1)

    q = q * cos + rot_half(q) * sin
    k = k * cos + rot_half(k) * sin

    q = q.transpose(0, 2, 1, 3)   # (B, H, S, hd)
    k = k.transpose(0, 2, 1, 3)
    v = v.transpose(0, 2, 1, 3)

    attn = jnp.einsum("bhqd,bhkd->bhqk", q, k) / math.sqrt(hd)
    attn = jax.nn.softmax(attn, axis=-1)
    out = jnp.einsum("bhqk,bhkd->bhqd", attn, v)
    out = out.transpose(0, 2, 1, 3).reshape(B, S, D)
    return out @ params["wo"] + params["bo"]


def init_params(key, dim):
    keys = jax.random.split(key, 8)
    scale = 0.05
    return {
        "wq": scale * jax.random.normal(keys[0], (dim, dim), jnp.float32),
        "bq": scale * jax.random.normal(keys[1], (dim,), jnp.float32),
        "wk": scale * jax.random.normal(keys[2], (dim, dim), jnp.float32),
        "bk": scale * jax.random.normal(keys[3], (dim,), jnp.float32),
        "wv": scale * jax.random.normal(keys[4], (dim, dim), jnp.float32),
        "bv": scale * jax.random.normal(keys[5], (dim,), jnp.float32),
        "wo": scale * jax.random.normal(keys[6], (dim, dim), jnp.float32),
        "bo": scale * jax.random.normal(keys[7], (dim,), jnp.float32),
    }


if __name__ == "__main__":
    B, S, DIM, HEADS = 2, 8, 32, 4

    key = jax.random.PRNGKey(0)
    kx, kp = jax.random.split(key)
    x = jax.random.normal(kx, (B, S, DIM), jnp.float32)
    params = init_params(kp, DIM)

    ref = rotary_self_attention_ref(x, params, HEADS)

    # f32-operand path: tight check (only the approx. reciprocal differs).
    out_f32 = rotary_self_attention_pallas(x, params, HEADS, use_bf16_matmul=False)
    out_f32 = jax.block_until_ready(out_f32)
    np.testing.assert_allclose(np.asarray(out_f32), np.asarray(ref),
                               rtol=2e-3, atol=2e-3)

    # bf16 MXU-operand path (recommended default on v6e/v7x): looser check.
    out_bf16 = rotary_self_attention_pallas(x, params, HEADS, use_bf16_matmul=True)
    out_bf16 = jax.block_until_ready(out_bf16)
    np.testing.assert_allclose(np.asarray(out_bf16.astype(jnp.float32)),
                               np.asarray(ref), rtol=5e-2, atol=1e-2)

    print("KERNEL_OK")
</pallas_src>

<mosaic_0001>
module attributes {stable_mosaic.version = 11 : i64} {
  func.func @_rotary_attn_head_kernel(%arg0: i32, %arg1: i32, %arg2: memref<1x8x32xf32, #tpu.memory_space<vmem>>, %arg3: memref<1x32x8xf32, #tpu.memory_space<vmem>>, %arg4: memref<1x1x8xf32, #tpu.memory_space<vmem>>, %arg5: memref<1x32x8xf32, #tpu.memory_space<vmem>>, %arg6: memref<1x1x8xf32, #tpu.memory_space<vmem>>, %arg7: memref<1x32x8xf32, #tpu.memory_space<vmem>>, %arg8: memref<1x1x8xf32, #tpu.memory_space<vmem>>, %arg9: memref<8x8xf32, #tpu.memory_space<vmem>>, %arg10: memref<8x8xf32, #tpu.memory_space<vmem>>, %arg11: memref<1x8x32xf32, #tpu.memory_space<vmem>>, %arg12: memref<1x32xf32, #tpu.memory_space<vmem>>, %arg13: memref<1x8x32xf32, #tpu.memory_space<vmem>>, %arg14: memref<8x32xf32, #tpu.memory_space<vmem>>) attributes {dimension_semantics = [#tpu.dimension_semantics<parallel>, #tpu.dimension_semantics<arbitrary>], iteration_bounds = array<i64: 2, 4>, scalar_prefetch = 0 : i64, scratch_operands = 1 : i64, tpu.core_type = #tpu.core_type<tc>, window_params = [{transform_indices = @transform_0, window_bounds = array<i64: 1, 8, 32>}, {transform_indices = @transform_1, window_bounds = array<i64: 1, 32, 8>}, {transform_indices = @transform_2, window_bounds = array<i64: 1, 1, 8>}, {transform_indices = @transform_3, window_bounds = array<i64: 1, 32, 8>}, {transform_indices = @transform_4, window_bounds = array<i64: 1, 1, 8>}, {transform_indices = @transform_5, window_bounds = array<i64: 1, 32, 8>}, {transform_indices = @transform_6, window_bounds = array<i64: 1, 1, 8>}, {pipeline_mode = #tpu.pipeline_mode<synchronous>, transform_indices = @transform_7, window_bounds = array<i64: 8, 8>}, {pipeline_mode = #tpu.pipeline_mode<synchronous>, transform_indices = @transform_8, window_bounds = array<i64: 8, 8>}, {transform_indices = @transform_9, window_bounds = array<i64: 1, 8, 32>}, {pipeline_mode = #tpu.pipeline_mode<synchronous>, transform_indices = @transform_10, window_bounds = array<i64: 1, 32>}, {transform_indices = @transform_11, window_bounds = array<i64: 1, 8, 32>}]} {
    %c0_i32 = arith.constant 0 : i32
    %0 = arith.cmpi eq, %arg1, %c0_i32 : i32
    %1 = arith.extui %0 : i1 to i32
    %c0_i32_0 = arith.constant 0 : i32
    %2 = arith.cmpi ne, %1, %c0_i32_0 : i32
    scf.if %2 {
      %cst_42 = arith.constant 0.000000e+00 : f32
      %71 = vector.broadcast %cst_42 : f32 to vector<8x32xf32>
      %c0_43 = arith.constant 0 : index
      %c0_44 = arith.constant 0 : index
      %72 = vector.load %arg14[%c0_43, %c0_44] : memref<8x32xf32, #tpu.memory_space<vmem>>, vector<8x32xf32>
      tpu.vector_store %arg14[%c0_43, %c0_44], %71 {strides = array<i32>} : memref<8x32xf32, #tpu.memory_space<vmem>>, vector<8x32xf32>,
    } else {
    }
    %c0 = arith.constant 0 : index
    %c0_1 = arith.constant 0 : index
    %c0_2 = arith.constant 0 : index
    %3 = vector.load %arg2[%c0, %c0_1, %c0_2] : memref<1x8x32xf32, #tpu.memory_space<vmem>>, vector<1x8x32xf32>
    %4 = vector.shape_cast %3 : vector<1x8x32xf32> to vector<8x32xf32>
    %c0_3 = arith.constant 0 : index
    %c0_4 = arith.constant 0 : index
    %c0_5 = arith.constant 0 : index
    %5 = vector.load %arg3[%c0_3, %c0_4, %c0_5] : memref<1x32x8xf32, #tpu.memory_space<vmem>>, vector<1x32x8xf32>
    %6 = vector.shape_cast %5 : vector<1x32x8xf32> to vector<32x8xf32>
    %cst = arith.constant dense<0.000000e+00> : vector<8x8xf32>
    %7 = tpu.matmul %4, %6, %cst {dimension_numbers = #tpu.dot_dimension_numbers<[1], [0], [0], [1], [0, 0, 1, 1], [], []>} : vector<8x32xf32>, vector<32x8xf32>, vector<8x8xf32> -> vector<8x8xf32>
    %c0_6 = arith.constant 0 : index
    %c0_7 = arith.constant 0 : index
    %c0_8 = arith.constant 0 : index
    %8 = vector.load %arg4[%c0_6, %c0_7, %c0_8] : memref<1x1x8xf32, #tpu.memory_space<vmem>>, vector<1x1x8xf32>
    %9 = vector.shape_cast %8 : vector<1x1x8xf32> to vector<1x8xf32>
    %10 = vector.broadcast %9 : vector<1x8xf32> to vector<8x8xf32>
    %11 = arith.addf %7, %10 : vector<8x8xf32>
    %cst_9 = arith.constant 0.353553385 : f32
    %12 = vector.broadcast %cst_9 : f32 to vector<8x8xf32>
    %13 = arith.mulf %11, %12 : vector<8x8xf32>
    %c0_10 = arith.constant 0 : index
    %c0_11 = arith.constant 0 : index
    %c0_12 = arith.constant 0 : index
    %14 = vector.load %arg5[%c0_10, %c0_11, %c0_12] : memref<1x32x8xf32, #tpu.memory_space<vmem>>, vector<1x32x8xf32>
    %15 = vector.shape_cast %14 : vector<1x32x8xf32> to vector<32x8xf32>
    %cst_13 = arith.constant dense<0.000000e+00> : vector<8x8xf32>
    %16 = tpu.matmul %4, %15, %cst_13 {dimension_numbers = #tpu.dot_dimension_numbers<[1], [0], [0], [1], [0, 0, 1, 1], [], []>} : vector<8x32xf32>, vector<32x8xf32>, vector<8x8xf32> -> vector<8x8xf32>
    %c0_14 = arith.constant 0 : index
    %c0_15 = arith.constant 0 : index
    %c0_16 = arith.constant 0 : index
    %17 = vector.load %arg6[%c0_14, %c0_15, %c0_16] : memref<1x1x8xf32, #tpu.memory_space<vmem>>, vector<1x1x8xf32>
    %18 = vector.shape_cast %17 : vector<1x1x8xf32> to vector<1x8xf32>
    %19 = vector.broadcast %18 : vector<1x8xf32> to vector<8x8xf32>
    %20 = arith.addf %16, %19 : vector<8x8xf32>
    %c0_17 = arith.constant 0 : index
    %c0_18 = arith.constant 0 : index
    %c0_19 = arith.constant 0 : index
    %21 = vector.load %arg7[%c0_17, %c0_18, %c0_19] : memref<1x32x8xf32, #tpu.memory_space<vmem>>, vector<1x32x8xf32>
    %22 = vector.shape_cast %21 : vector<1x32x8xf32> to vector<32x8xf32>
    %cst_20 = arith.constant dense<0.000000e+00> : vector<8x8xf32>
    %23 = tpu.matmul %4, %22, %cst_20 {dimension_numbers = #tpu.dot_dimension_numbers<[1], [0], [0], [1], [0, 0, 1, 1], [], []>} : vector<8x32xf32>, vector<32x8xf32>, vector<8x8xf32> -> vector<8x8xf32>
    %c0_21 = arith.constant 0 : index
    %c0_22 = arith.constant 0 : index
    %c0_23 = arith.constant 0 : index
    %24 = vector.load %arg8[%c0_21, %c0_22, %c0_23] : memref<1x1x8xf32, #tpu.memory_space<vmem>>, vector<1x1x8xf32>
    %25 = vector.shape_cast %24 : vector<1x1x8xf32> to vector<1x8xf32>
    %26 = vector.broadcast %25 : vector<1x8xf32> to vector<8x8xf32>
    %27 = arith.addf %23, %26 : vector<8x8xf32>
    %c0_24 = arith.constant 0 : index
    %c0_25 = arith.constant 0 : index
    %28 = vector.load %arg9[%c0_24, %c0_25] : memref<8x8xf32, #tpu.memory_space<vmem>>, vector<8x8xf32>
    %c0_26 = arith.constant 0 : index
    %c0_27 = arith.constant 0 : index
    %29 = vector.load %arg10[%c0_26, %c0_27] : memref<8x8xf32, #tpu.memory_space<vmem>>, vector<8x8xf32>
    %30 = vector.extract_strided_slice %28 {offsets = [0, 0], sizes = [8, 4], strides = [1, 1]} : vector<8x8xf32> to vector<8x4xf32>
    %31 = vector.extract_strided_slice %29 {offsets = [0, 4], sizes = [8, 4], strides = [1, 1]} : vector<8x8xf32> to vector<8x4xf32>
    %32 = vector.extract_strided_slice %13 {offsets = [0, 0], sizes = [8, 4], strides = [1, 1]} : vector<8x8xf32> to vector<8x4xf32>
    %33 = vector.extract_strided_slice %13 {offsets = [0, 4], sizes = [8, 4], strides = [1, 1]} : vector<8x8xf32> to vector<8x4xf32>
    %34 = vector.extract_strided_slice %20 {offsets = [0, 0], sizes = [8, 4], strides = [1, 1]} : vector<8x8xf32> to vector<8x4xf32>
    %35 = vector.extract_strided_slice %20 {offsets = [0, 4], sizes = [8, 4], strides = [1, 1]} : vector<8x8xf32> to vector<8x4xf32>
    %36 = arith.mulf %32, %30 : vector<8x4xf32>
    %37 = arith.mulf %33, %31 : vector<8x4xf32>
    %38 = arith.subf %36, %37 : vector<8x4xf32>
    %39 = arith.mulf %33, %30 : vector<8x4xf32>
    %40 = arith.mulf %32, %31 : vector<8x4xf32>
    %41 = arith.addf %39, %40 : vector<8x4xf32>
    %42 = arith.mulf %34, %30 : vector<8x4xf32>
    %43 = arith.mulf %35, %31 : vector<8x4xf32>
    %44 = arith.subf %42, %43 : vector<8x4xf32>
    %45 = arith.mulf %35, %30 : vector<8x4xf32>
    %46 = arith.mulf %34, %31 : vector<8x4xf32>
    %47 = arith.addf %45, %46 : vector<8x4xf32>
    %cst_28 = arith.constant dense<0.000000e+00> : vector<8x8xf32>
    %48 = tpu.matmul %38, %44, %cst_28 {dimension_numbers = #tpu.dot_dimension_numbers<[1], [1], [0], [0], [0, 0, 1, 0], [], []>} : vector<8x4xf32>, vector<8x4xf32>, vector<8x8xf32> -> vector<8x8xf32>
    %cst_29 = arith.constant dense<0.000000e+00> : vector<8x8xf32>
    %49 = tpu.matmul %41, %47, %cst_29 {dimension_numbers = #tpu.dot_dimension_numbers<[1], [1], [0], [0], [0, 0, 1, 0], [], []>} : vector<8x4xf32>, vector<8x4xf32>, vector<8x8xf32> -> vector<8x8xf32>
    %50 = arith.addf %48, %49 : vector<8x8xf32>
    %cst_30 = arith.constant dense<0xFF800000> : vector<8xf32>
    %51 = vector.multi_reduction <maximumf>, %50, %cst_30 [1] : vector<8x8xf32> to vector<8xf32>
    %52 = vector.shape_cast %51 : vector<8xf32> to vector<8x1xf32>
    %53 = vector.broadcast %52 : vector<8x1xf32> to vector<8x8xf32>
    %54 = arith.subf %50, %53 : vector<8x8xf32>
    %55 = math.exp %54 : vector<8x8xf32>
    %cst_31 = arith.constant dense<0.000000e+00> : vector<8xf32>
    %56 = vector.multi_reduction <add>, %55, %cst_31 [1] : vector<8x8xf32> to vector<8xf32>
    %57 = vector.shape_cast %56 : vector<8xf32> to vector<8x1xf32>
    %58 = tpu.reciprocal %57 {approx = true} : vector<8x1xf32> -> vector<8x1xf32>
    %59 = vector.broadcast %58 : vector<8x1xf32> to vector<8x8xf32>
    %60 = arith.mulf %55, %59 : vector<8x8xf32>
    %cst_32 = arith.constant dense<0.000000e+00> : vector<8x8xf32>
    %61 = tpu.matmul %60, %27, %cst_32 {dimension_numbers = #tpu.dot_dimension_numbers<[1], [0], [0], [1], [0, 0, 1, 1], [], []>} : vector<8x8xf32>, vector<8x8xf32>, vector<8x8xf32> -> vector<8x8xf32>
    %c0_33 = arith.constant 0 : index
    %c0_34 = arith.constant 0 : index
    %62 = vector.load %arg14[%c0_33, %c0_34] : memref<8x32xf32, #tpu.memory_space<vmem>>, vector<8x32xf32>
    %c0_35 = arith.constant 0 : index
    %c0_36 = arith.constant 0 : index
    %c0_37 = arith.constant 0 : index
    %63 = vector.load %arg11[%c0_35, %c0_36, %c0_37] : memref<1x8x32xf32, #tpu.memory_space<vmem>>, vector<1x8x32xf32>
    %64 = vector.shape_cast %63 : vector<1x8x32xf32> to vector<8x32xf32>
    %cst_38 = arith.constant dense<0.000000e+00> : vector<8x32xf32>
    %65 = tpu.matmul %61, %64, %cst_38 {dimension_numbers = #tpu.dot_dimension_numbers<[1], [0], [0], [1], [0, 0, 1, 1], [], []>} : vector<8x8xf32>, vector<8x32xf32>, vector<8x32xf32> -> vector<8x32xf32>
    %66 = arith.addf %62, %65 : vector<8x32xf32>
    %c0_39 = arith.constant 0 : index
    %c0_40 = arith.constant 0 : index
    %67 = vector.load %arg14[%c0_39, %c0_40] : memref<8x32xf32, #tpu.memory_space<vmem>>, vector<8x32xf32>
    tpu.vector_store %arg14[%c0_39, %c0_40], %66 {strides = array<i32>} : memref<8x32xf32, #tpu.memory_space<vmem>>, vector<8x32xf32>,
    %c3_i32 = arith.constant 3 : i32
    %68 = arith.cmpi eq, %arg1, %c3_i32 : i32
    %69 = arith.extui %68 : i1 to i32
    %c0_i32_41 = arith.constant 0 : i32
    %70 = arith.cmpi ne, %69, %c0_i32_41 : i32
    scf.if %70 {
      %c0_42 = arith.constant 0 : index
      %c0_43 = arith.constant 0 : index
      %71 = vector.load %arg14[%c0_42, %c0_43] : memref<8x32xf32, #tpu.memory_space<vmem>>, vector<8x32xf32>
      %c0_44 = arith.constant 0 : index
      %c0_45 = arith.constant 0 : index
      %72 = vector.load %arg12[%c0_44, %c0_45] : memref<1x32xf32, #tpu.memory_space<vmem>>, vector<1x32xf32>
      %73 = vector.broadcast %72 : vector<1x32xf32> to vector<8x32xf32>
      %74 = arith.addf %71, %73 : vector<8x32xf32>
      %c0_46 = arith.constant 0 : index
      %c0_47 = arith.constant 0 : index
      %c0_48 = arith.constant 0 : index
      %75 = vector.load %arg13[%c0_46, %c0_47, %c0_48] : memref<1x8x32xf32, #tpu.memory_space<vmem>>, vector<1x8x32xf32>
      %76 = vector.shape_cast %75 : vector<1x8x32xf32> to vector<8x32xf32>
      %77 = vector.shape_cast %74 : vector<8x32xf32> to vector<1x8x32xf32>
      tpu.vector_store %arg13[%c0_46, %c0_47, %c0_48], %77 {strides = array<i32>} : memref<1x8x32xf32, #tpu.memory_space<vmem>>, vector<1x8x32xf32>,
    } else {
    }
    return
  }
  func.func @transform_0(%arg0: i32, %arg1: i32) -> (i32, i32, i32) {
    %c0_i32 = arith.constant 0 : i32
    %c0_i32_0 = arith.constant 0 : i32
    %c0_i32_1 = arith.constant 0 : i32
    return %arg0, %c0_i32, %c0_i32_0 : i32, i32, i32
  }
  func.func @transform_1(%arg0: i32, %arg1: i32) -> (i32, i32, i32) {
    %c0_i32 = arith.constant 0 : i32
    %c0_i32_0 = arith.constant 0 : i32
    %c0_i32_1 = arith.constant 0 : i32
    return %arg1, %c0_i32, %c0_i32_0 : i32, i32, i32
  }
  func.func @transform_2(%arg0: i32, %arg1: i32) -> (i32, i32, i32) {
    %c0_i32 = arith.constant 0 : i32
    %c0_i32_0 = arith.constant 0 : i32
    %c0_i32_1 = arith.constant 0 : i32
    return %arg1, %c0_i32, %c0_i32_0 : i32, i32, i32
  }
  func.func @transform_3(%arg0: i32, %arg1: i32) -> (i32, i32, i32) {
    %c0_i32 = arith.constant 0 : i32
    %c0_i32_0 = arith.constant 0 : i32
    %c0_i32_1 = arith.constant 0 : i32
    return %arg1, %c0_i32, %c0_i32_0 : i32, i32, i32
  }
  func.func @transform_4(%arg0: i32, %arg1: i32) -> (i32, i32, i32) {
    %c0_i32 = arith.constant 0 : i32
    %c0_i32_0 = arith.constant 0 : i32
    %c0_i32_1 = arith.constant 0 : i32
    return %arg1, %c0_i32, %c0_i32_0 : i32, i32, i32
  }
  func.func @transform_5(%arg0: i32, %arg1: i32) -> (i32, i32, i32) {
    %c0_i32 = arith.constant 0 : i32
    %c0_i32_0 = arith.constant 0 : i32
    %c0_i32_1 = arith.constant 0 : i32
    return %arg1, %c0_i32, %c0_i32_0 : i32, i32, i32
  }
  func.func @transform_6(%arg0: i32, %arg1: i32) -> (i32, i32, i32) {
    %c0_i32 = arith.constant 0 : i32
    %c0_i32_0 = arith.constant 0 : i32
    %c0_i32_1 = arith.constant 0 : i32
    return %arg1, %c0_i32, %c0_i32_0 : i32, i32, i32
  }
  func.func @transform_7(%arg0: i32, %arg1: i32) -> (i32, i32) {
    %c0_i32 = arith.constant 0 : i32
    %c0_i32_0 = arith.constant 0 : i32
    %c0_i32_1 = arith.constant 0 : i32
    return %c0_i32, %c0_i32_0 : i32, i32
  }
  func.func @transform_8(%arg0: i32, %arg1: i32) -> (i32, i32) {
    %c0_i32 = arith.constant 0 : i32
    %c0_i32_0 = arith.constant 0 : i32
    %c0_i32_1 = arith.constant 0 : i32
    return %c0_i32, %c0_i32_0 : i32, i32
  }
  func.func @transform_9(%arg0: i32, %arg1: i32) -> (i32, i32, i32) {
    %c0_i32 = arith.constant 0 : i32
    %c0_i32_0 = arith.constant 0 : i32
    %c0_i32_1 = arith.constant 0 : i32
    return %arg1, %c0_i32, %c0_i32_0 : i32, i32, i32
  }
  func.func @transform_10(%arg0: i32, %arg1: i32) -> (i32, i32) {
    %c0_i32 = arith.constant 0 : i32
    %c0_i32_0 = arith.constant 0 : i32
    %c0_i32_1 = arith.constant 0 : i32
    return %c0_i32, %c0_i32_0 : i32, i32
  }
  func.func @transform_11(%arg0: i32, %arg1: i32) -> (i32, i32, i32) {
    %c0_i32 = arith.constant 0 : i32
    %c0_i32_0 = arith.constant 0 : i32
    %c0_i32_1 = arith.constant 0 : i32
    return %arg0, %c0_i32, %c0_i32_0 : i32, i32, i32
  }
}

</mosaic_0001>

<bundles_post_ra>
// kernel: tpu_custom_call.1
= control target key start
LH: loop header
LB: loop body
LE: loop exit
PB: predicated region body
PF: predicated region fallthrough
CT: control target
= control target key end

     0   :  { %s1421_s0 = inlined_call_operand.vmem [shape: f32[2,8,32], index: 0, kind: input, shape index: {}]   ;;  %s1422_s1 = inlined_call_operand.vmem [shape: f32[4,32,8], index: 1, kind: input, shape index: {}]   ;;  %s1423_s2 = inlined_call_operand.vmem [shape: f32[4,1,8], index: 2, kind: input, shape index: {}]   ;;  %s1424_s3 = inlined_call_operand.vmem [shape: f32[4,32,8], index: 3, kind: input, shape index: {}]   ;;  %s1425_s4 = inlined_call_operand.vmem [shape: f32[4,1,8], index: 4, kind: input, shape index: {}]   ;;  %s1426_s5 = inlined_call_operand.vmem [shape: f32[4,32,8], index: 5, kind: input, shape index: {}]   ;;  %s1427_s6 = inlined_call_operand.vmem [shape: f32[4,1,8], index: 6, kind: input, shape index: {}]   ;;  %s1428_s7 = inlined_call_operand.vmem [shape: f32[8,8], index: 7, kind: input, shape index: {}]   ;;  %s1429_s8 = inlined_call_operand.vmem [shape: f32[8,8], index: 8, kind: input, shape index: {}]   ;;  %s1430_s9 = inlined_call_operand.vmem [shape: f32[4,8,32], index: 9, kind: input, shape index: {}]   ;;  %s1431_s10 = inlined_call_operand.vmem [shape: f32[1,32], index: 10, kind: input, shape index: {}]   ;;  %s1432_s11 = inlined_call_operand.hbm [shape: f32[2,8,32], index: 11, kind: output, shape index: {}]  }
   0x1   :  { %1447 = sst [smem:[#allocation18_spill]] %s1421_s0 }
   0x2   :  { %1448 = sst [smem:[#allocation19_spill]] %s1422_s1 }
   0x3   :  { %1449 = sst [smem:[#allocation20_spill]] %s1432_s11 }
   0x4   :  { %16 = vsyncpa [#allocation4], 0 }
   0x5   :  { %18 = vsyncpa [#allocation4 + $0x1], 0  ;;  %s1211_s17 = smov 0   ;;  %s1213_s18 = smov 0  }
   0x6   :  { %s1215_s19 = smov 0   ;;  %s1217_s20 = smov 0  }
   0x7   :  { %s1219_s21 = smov 0   ;;  %s1221_s22 = smov 0  }
   0x8   :  { %s1223_s23 = smov 0   ;;  %s1225_s24 = smov 0  }
   0x9 LB: > { %1450 = sst [smem:[#allocation6_spill]] %s1118_s17  ;;  %s938_s25 = sadd.s32 4294967295, %s1146_s24   ;;  %s1146_s24 = sphi %s1225_s24, %s24_s24   ;;  %s1142_s23 = sphi %s1223_s23, %s1482_s23   ;;  %s1138_s22 = sphi %s1221_s22, %s1481_s22   ;;  %s1134_s21 = sphi %s1219_s21, %s1480_s21   ;;  %s1130_s20 = sphi %s1217_s20, %s1479_s20   ;;  %s1126_s19 = sphi %s1215_s19, %s1478_s19   ;;  %s1122_s18 = sphi %s1213_s18, %s1477_s18   ;;  %s1118_s17 = sphi %s1211_s17, %s1476_s17  }
   0xa   : > { %1451 = sst [smem:[#allocation7_spill]] %s1122_s18  ;;  %s939_s26 = sadd.s32 4294967294, %s1146_s24  }
   0xb   : > { %1452 = sst [smem:[#allocation8_spill]] %s1126_s19  ;;  %s33_s27 = sadd.s32 1, %s1138_s22 }
   0xc   : > { %1453 = sst [smem:[#allocation9_spill]] %s1134_s21  ;;  %p34_p0 = scmp.ge.s32.totalorder %s33_s27, 4 }
   0xd   : > { %1454 = sst [smem:[#allocation10_spill]] %s1138_s22  ;;  %s36_s28 = sadd.s32 1, %s1142_s23 }
   0xe   : > { %1455 = sst [smem:[#allocation11_spill]] %s1142_s23  ;;  %p324_p1 = scmp.ne.s32.totalorder %s1126_s19, %s1122_s18 }
   0xf   : > { %1456 = sst [smem:[#allocation12_spill]] %s1146_s24  ;;  %p325_p2 = scmp.eq.s32.totalorder %s938_s25, 7 }
  0x10   : > { %s1484_s27 = smov (%p34_p0, %s33_s27), 0  ;;  %s1486_s28 = smov (!%p34_p0, %s36_s28), %s1142_s23 }
  0x11   : > { %1457 = sst [smem:[#allocation13_spill]] %s1484_s27  ;;  %p1260_p3 = por %p325_p2, %p324_p1 }
  0x12   : > { %p330_p4 = scmp.ne.s32.totalorder %s1122_s18, %s1118_s17  ;;  %p38_p5 = scmp.ge.s32.totalorder %s1486_s28, 2 }
  0x13   : > { %s1458_s29 = scalar_select %p1260_p3, 1, 0 }
  0x14   : > { %p331_p6 = scmp.eq.s32.totalorder %s939_s26, 7  ;;  %p942_p7 = scmp.ge.s32.totalorder %s1146_s24, 1 }
  0x15   : > { %1459 = sst [smem:[#allocation14_spill]] %s1458_s29  ;;  %p414_p8 = scmp.lt.s32.totalorder %s1146_s24, 9 }
  0x16   : > { %s1488_s28 = smov (%p38_p5, %s1486_s28), 0  ;;  %p1270_p9 = por %p331_p6, %p330_p4 }
  0x17   : > { %1460 = sst [smem:[#allocation15_spill]] %s1488_s28  ;;  %p415_p10 = pnand %p942_p7, %p414_p8 }
  0x18   : > { %s1461_s30 = scalar_select %p1270_p9, 1, 0 }
  0x19   : > { %s311_s12 = ssub.s32 %s1142_s23, %s1488_s28  ;;  %s314_s13 = sadd.s32 1, %s1126_s19 }
  0x1a   : > { %1462 = sst [smem:[#allocation16_spill]] %s1461_s30  ;;  %p312_p11 = scmp.eq.s32.totalorder %s311_s12, 0 }
  0x1b   : > { %418 = sbr.rel (%p415_p10) target bundleno = 1086 (0x43e), region = 64  ;;  %s1436_s15 = sand.u32 (!%p415_p10), 1, %s1122_s18  }
  0x1c   : > { %s1278_s14 = scalar_select %p312_p11, %s1126_s19, %s314_s13  }
  0x1d   : > { %p481_p12 = scmp.lt.s32.totalorder (!%p415_p10), %s1134_s21, 1  ;;  %s1284_s16 = sshll.u32 (!%p415_p10), %s1436_s15, 3 }
  0x1e   : > { %1463 = sst [smem:[#allocation17_spill]] %s1278_s14  ;;  %p485_p13 = scmp.lt.s32.totalorder (!%p415_p10), %s1130_s20, 3 }
  0x1f   : > { %s1464_s0 = sld [smem:[#allocation18_spill]] (!%p415_p10)  ;;  %s480_s11 = scalar_lea.vmem (!%p415_p10), [#allocation3], %s1284_s16 }
  0x20   : > { %s482_s25 = scalar_select %p481_p12, %s1134_s21, 1 }
  0x21   : > { %s1289_s26 = scalar_select %p485_p13, %s1130_s20, 3 }
  0x22   : > { %s944_s12 = sshll.u32 %s482_s25, 3  ;;  %s1465_s1 = sld [smem:[#allocation19_spill]] }
  0x23   : > { %s967_s23 = sshll.u32 %s1289_s26, 5  ;;  %s500_s21 = scalar_lea.vmem %s1425_s4, %s1289_s26 }
  0x24   : > { %s497_s29 = scalar_lea.vmem %s1424_s3, %s967_s23  ;;  %s1314_s13 = scalar_lea.vmem %s1426_s5, %s967_s23 }
  0x25   : > { %s1294_s27 = scalar_lea.vmem %s1464_s0, %s944_s12  ;;  %s508_s15 = scalar_lea.vmem %s1427_s6, %s1289_s26 }
  0x26   : > { %p952_p0 = scmp.ne.s32.totalorder %s1130_s20, 0 }
  0x28   : > { %s489_s14 = scalar_lea.vmem %s1465_s1, %s967_s23  ;;  %s951_s1 = sshll.u32 %s1289_s26, 3 }
  0x29   : > { %s1324_s17 = scalar_lea.vmem %s1430_s9, %s951_s1  ;;  %516 = sbr.rel (%p952_p0) target bundleno = 48 (0x30), region = 68 }
  0x2e   : > { %vm517_vm0 = vcmask 261120   ;;  %v1148_v0 = vmov 0.0  }
  0x2f   : > { %518 = vst.msk [vmem:[#allocation2] sm:$0xff] %vm517_vm0, %v1148_v0 }
  0x30 PF: > { %v523_v1 = vld [vmem:[%s489_s14 + $0x18] sm:$0xff]  ;;  %v522_v3 = vld [vmem:[%s489_s14 + $0x10] sm:$0xff]  ;;  %v521_v5 = vld [vmem:[%s489_s14 + $0x8] sm:$0xff]  ;;  %s1149_s18 = smov 124   ;;  %vm528_vm1 = vcmask 261120   ;;  %s1466_s12 = scalar_lea.vmem %s1423_s2, %s1289_s26  ;;  %vm653_vm2 = vcmask 31744  }
  0x31   : > { %v556_v2 = vld [vmem:[%s497_s29 + $0x18] sm:$0xff]  ;;  %544 = vmatpush.msra.mxu0 %v523_v1  ;;  %v555_v4 = vld [vmem:[%s497_s29 + $0x10] sm:$0xff]  ;;  %v554_v6 = vld [vmem:[%s497_s29 + $0x8] sm:$0xff]  ;;  %vm704_vm3 = vcmask 64512   ;;  %p962_p1 = scmp.ne.s32.totalorder %s1130_s20, 3 }
  0x32   : > { %573 = vmatpush.msra.mxu1 %v556_v2  ;;  %v520_v7 = vld [vmem:[%s489_s14] sm:$0xff]  ;;  %s1150_s14 = smov 4   ;;  %v584_v39 = vld [vmem:[%s1314_s13 + $0x18] sm:$0xff]  ;;  %v583_v40 = vld [vmem:[%s1314_s13 + $0x10] sm:$0xff] }
  0x33   : > { %545 = vmatpush.msra.mxu0 %v522_v3  ;;  %v610_v8 = vld [vmem:[%s1429_s8] sm:$0xff]  ;;  %601 = vmatpush.msra.mxu2 %v584_v39  ;;  %v582_v41 = vld [vmem:[%s1314_s13 + $0x8] sm:$0xff] }
  0x34   : > { %574 = vmatpush.msra.mxu1 %v555_v4  ;;  %v553_v9 = vld [vmem:[%s497_s29] sm:$0xff]  ;;  %624 = vrot.lane.b32.xlu0 %v610_v8, %s1149_s18 }
  0x35   : > { %546 = vmatpush.msra.mxu0 %v521_v5  ;;  %v519_v10 = vld [vmem:[%s1294_s27] sm:$0xff]  ;;  %602 = vmatpush.msra.mxu2 %v583_v40 }
  0x36   : > { %575 = vmatpush.msra.mxu1 %v554_v6  ;;  %v609_v11 = vld [vmem:[%s1428_s7] sm:$0xff] }
  0x37   : > { %547 = vmatpush.msra.mxu0 %v520_v7  ;;  %v1045_v12 = vld [vmem:[%s500_s21] ss:$0 sm:$0xff]  ;;  %603 = vmatpush.msra.mxu2 %v582_v41 }
  0x38   : > { %576 = vmatpush.msra.mxu1 %v553_v9  ;;  %953 = vmatmul.msk.f32.vlgmr.msra.gmra.mxu0 %vm528_vm1, %v519_v10  ;;  %v1044_v13 = vld [vmem:[%s1466_s12] ss:$0 sm:$0xff] }
  0x39   : > { %954 = vmatmul.msk.f32.vlgmr.msra.gmra.mxu1 %vm528_vm1, %v519_v10  ;;  %v581_v42 = vld [vmem:[%s1314_s13] sm:$0xff] }
  0x3a   : > { %604 = vmatpush.msra.mxu2 %v581_v42  ;;  %v1046_v47 = vld [vmem:[%s508_s15] ss:$0 sm:$0xff] }
  0x3b   : > { %955 = vmatmul.msk.f32.vlgmr.msra.gmra.mxu2 %vm528_vm1, %v519_v10  ;;  %v740_v55 = vld [vmem:[%s1324_s17] sm:$0xff] }
  0x3c   : > { %619 = vrot.lane.b32.xlu0 %v609_v11, %s1150_s14  ;;  %759 = vmatpush.msrb.mxu1 %v740_v55  ;;  %v739_v60 = vld [vmem:[#allocation2] sm:$0xff] }
  0xa6   : > { %v625_v17 = vpop.permute.xlu0 %624 }
  0xae   : > { %v620_v24 = vpop.permute.xlu0 %619 }
  0xb5   : > { %v549_v14 = vpop.f32.mrf.mxu0 }
  0xb6   : > { %v578_v15 = vpop.f32.mrf.mxu1  ;;  %v550_v18 = vadd.f32 %v1044_v13, %v549_v14 }
  0xb7   : > { %v579_v16 = vadd.f32 %v1045_v12, %v578_v15 }
  0xb8   : > { %v552_v21 = vmul.f32 0.35355338, %v550_v18 }
  0xb9   : > { %v641_v19 = vmul.f32 %v625_v17, %v579_v16  ;;  %v634_v20 = vmul.f32 %v610_v8, %v579_v16  ;;  %v640_v25 = vmul.f32 %v620_v24, %v579_v16  ;;  %v633_v32 = vmul.f32 %v609_v11, %v579_v16 }
  0xba   : > { %v627_v22 = vmul.f32 %v625_v17, %v552_v21  ;;  %v612_v23 = vmul.f32 %v610_v8, %v552_v21  ;;  %v622_v28 = vmul.f32 %v620_v24, %v552_v21  ;;  %v611_v37 = vmul.f32 %v609_v11, %v552_v21 }
  0xbb   : > { %643 = vrot.lane.b32.xlu1 %v641_v19, %s1150_s14  ;;  %636 = vrot.lane.b32.xlu0 %v634_v20, %s1149_s18 }
  0xbe   : > { %v606_v48 = vpop.f32.mrf.mxu2 }
  0xbf   : > { %v607_v49 = vadd.f32 %v1046_v47, %v606_v48 }
  0xc1   : > { %734 = vmatpush.msrb.mxu0 %v607_v49 }
  0xc3   : > { %629 = vrot.lane.b32.xlu1 %v627_v22, %s1150_s14 }
  0xcb   : > { %614 = vrot.lane.b32.xlu1 %v612_v23, %s1149_s18 }
 0x12d   : > { %v644_v26 = vpop.permute.xlu1 %643  ;;  %v637_v31 = vpop.permute.xlu0 %636 }
 0x12e   : > { %v646_v27 = vadd.f32 %v644_v26, %v640_v25  ;;  %v639_v33 = vsub.f32 %v633_v32, %v637_v31 }
 0x130   : > { %651 = vrot.lane.b32.xlu2 %v646_v27, %s1149_s18 }
 0x135   : > { %v630_v29 = vpop.permute.xlu1 %629 }
 0x136   : > { %v632_v30 = vadd.f32 %v630_v29, %v622_v28 }
 0x138   : > { %648 = vrot.lane.b32.xlu2 %v632_v30, %s1149_s18 }
 0x13d   : > { %v615_v36 = vpop.permute.xlu1 %614 }
 0x13e   : > { %v617_v38 = vsub.f32 %v611_v37, %v615_v36 }
 0x18a   : > { %v652_v34 = vpop.permute.xlu2 %651 }
 0x18b   : > { %956 = vmatpush.xpose.msk.msra.mxu3 %vm653_vm2, %v652_v34 }
 0x18f   : > { %958 = vmatpush.xpose.msk.msrb.mxu3 %vm653_vm2, %v639_v33 }
 0x192   : > { %v649_v35 = vpop.permute.xlu2 %648 }
 0x193   : > { %957 = vmatmul.msk.f32.vlgmr.msra.gmra.mxu3 %vm653_vm2, %v649_v35 }
 0x19b   : > { %959 = vmatmul.msk.f32.vlgmr.msrb.gmra.mxu3 %vm653_vm2, %v617_v38 }
 0x216   : > { %v675_v43 = vpop.f32.mrf.mxu3 }
 0x21e   : > { %v701_v44 = vpop.f32.mrf.mxu3 }
 0x21f   : > { %v702_v45 = vadd.f32 %v701_v44, %v675_v43 }
 0x221   : > { %v705_v46 = vsel %vm704_vm3, %v702_v45, -inf }
 0x222   : > { %706 = vmax.xlane.f32.xlu2 %v705_v46 }
 0x295   : > { %v707_v50 = vpop.xlane.xlu2 %706 }
 0x296   : > { %v708_v51 = vsub.f32 %v702_v45, %v707_v50 }
 0x298   : > { %v709_v52 = vmul.f32 1.442695, %v708_v51 }
 0x29a   : > { %1047 = vpow2.f32 %v709_v52 }
 0x2a0   : > { %v1048_v53 = vpop.eup %1047 }
 0x2a1   : > { %v711_v54 = vsel %vm704_vm3, %v1048_v53, 0.0 }
 0x2a2   : > { %712 = vadd.xlane.f32.xlu0 %v711_v54 }
 0x315   : > { %v713_v56 = vpop.xlane.xlu0 %712 }
 0x316   : > { %1049 = vrcp.f32 %v713_v56 }
 0x31c   : > { %v1050_v57 = vpop.eup %1049 }
 0x31d   : > { %v715_v58 = vmul.f32 %v1050_v57, %v1048_v53 }
 0x31f   : > { %960 = vmatmul.msk.f32.vlgmr.msrb.gmra.mxu0 %vm704_vm3, %v715_v58 }
 0x39c   : > { %v736_v59 = vpop.f32.mrf.mxu0 }
 0x39d   : > { %961 = vmatmul.msk.f32.vlgmr.msrb.gmra.mxu1 %vm704_vm3, %v736_v59 }
 0x419   : > { %769 = sbr.rel (%p962_p1) target bundleno = 1064 (0x428), region = 72 }
 0x41a   : > { %v761_v61 = vpop.f32.mrf.mxu1 }
 0x41b   : > { %v764_v62 = vadd.f32 %v761_v61, %v739_v60 }
 0x41d   : > { %765 = vst.msk [vmem:[#allocation2] sm:$0xff] %vm528_vm1, %v764_v62 }
 0x41e   : > { %v1051_v0 = vld [vmem:[%s1431_s10] ss:$0 sm:$0xff] }
 0x424   : > { %v770_v63 = vld [vmem:[#allocation2] sm:$0xff] }
 0x425   : > { %v775_v1 = vadd.f32 %v1051_v0, %v770_v63 }
 0x427   : > { %776 = vst.msk [vmem:[%s480_s11] sm:$0xff] %vm528_vm1, %v775_v1 }
 0x428 PF: > { %s1467_s13 = sld [smem:[#allocation9_spill]]  ;;  %s790_s23 = sshll.u32 %s480_s11, 4  ;;  %s791_s23 = int_to_ptr.vmem [resolvable:$true] %s790_s23 }
 0x429   : > { %s1468_s15 = sld [smem:[#allocation7_spill]] }
 0x42a   : > { %s1470_s20 = sld [smem:[#allocation20_spill]] }
 0x42e   : > { %s964_s30 = sshll.u32 %s1467_s13, 3 }
 0x42f   : > { %s1472_s29 = sand.u32 1, %s1468_s15  }
 0x430   : > { %s1471_s14 = smov %s1470_s20  ;;  %s788_s18 = scalar_lea.hbm %s1470_s20, %s964_s30 }
 0x431   : > { %s792_s24 = sshll.u32 %s788_s18, 4  ;;  %s778_s25 = scalar_lea.sflag [#allocation4], %s1472_s29  ;;  %s793_s24 = int_to_ptr.hbm [resolvable:$true] %s792_s24 }
 0x432   : > { %s1066_s28 = sshra.s32 %s793_s24, 4  ;;  %s1072_s22 = scalar_lea.hbm %s1471_s14, 16  ;;  %s1067_s28 = int_to_ptr.hbm [resolvable:$true] %s1066_s28 }
 0x433   : > { %s1068_s27 = scalar_lea.hbm %s1067_s28, 8  ;;  %p1073_p6 = scmp.lt.s32.totalorder %s1067_s28, %s1471_s14 }
 0x434   : > { %p1069_p2 = scmp.ne.s32.totalorder %s1067_s28, %s1068_s27  ;;  %p1074_p7 = scmp.lt.s32.totalorder %s1072_s22, %s1068_s27 }
 0x436   : > { %p1070_p4 = pnand %p1069_p2, %p1260_p3  ;;  %p1075_p8 = por %p1074_p7, %p1073_p6 }
 0x438   : > { %p1071_p5 = pneg %p1070_p4 }
 0x43a   : > { %p1076_p10 = pnand %p1075_p8, %p1071_p5 }
 0x43c   : > { %1079 = shalt.err (!%p1076_p10)
}
 0x43d   : > { %970 = dma.vmem_to_hbm [thread:$0]  (%p1260_p3), %s791_s23, 128, %s793_s24, %s778_s25  }
 0x43e PF: > { %s1473_s16 = sld [smem:[#allocation12_spill]] }
 0x43f   : > { %s1474_s11 = sld [smem:[#allocation6_spill]] }
 0x444   : > { %p976_p11 = scmp.ge.s32.totalorder %s1473_s16, 2 }
 0x445   : > { %s804_s15 = sand.u32 1, %s1474_s11  }
 0x446   : > { %p973_p12 = pnand %p976_p11, %p1270_p9  ;;  %s805_s30 = scalar_lea.sflag [#allocation4], %s804_s15 }
 0x448   : > { %p974_p13 = pneg %p973_p12 }
 0x44a   : > { %1113 = dma.done.wait (%p974_p13), %s805_s30, 128  }
 0x44b   : > { %1115 = vsyncadd (%p974_p13), %s805_s30, 4294967168  ;;  %s24_s24 = sadd.s32 1, %s1473_s16   ;;  %s1476_s17 = sld [smem:[#allocation7_spill]] }
 0x44c   : > { %p21_p0 = scmp.ge.s32.totalorder %s24_s24, 10   ;;  %s1477_s18 = sld [smem:[#allocation8_spill]] }
 0x44d   : > { %s1478_s19 = sld [smem:[#allocation17_spill]] }
 0x44e   : > { %s1479_s20 = sld [smem:[#allocation10_spill]]  ;;  %23 = sbr.rel (!%p21_p0) target bundleno = 9 (0x9), region = 128 }
 0x44f   : > { %s1480_s21 = sld [smem:[#allocation11_spill]] }
 0x450   : > { %s1481_s22 = sld [smem:[#allocation13_spill]] }
 0x451   : > { %s1482_s23 = sld [smem:[#allocation15_spill]] }
 0x453   :  { %811 = vsyncpa [#allocation4], 1 }
 0x454   :  { %813 = vsyncpa [#allocation4 + $0x1], 1 }

</bundles_post_ra>
